<compile_context>
chip_gen: v5e
topology: v5e:2x2
jax: 0.10.0
libtpu: 0.0.40
codegen_flags: <defaults>
</compile_context>

<pallas_src>
import jax
import jax.numpy as jnp
from jax.experimental import pallas as pl
from jax.experimental.pallas import tpu as pltpu

H = 16
W = 16
HW = H * W            # 256 (power of two, multiple of 128 -> lane-dense)
CIN = 3               # conv1 in-channels
CMID = 16             # conv1 out-channels / conv2 in-channels
COUT = 1              # conv2 out-channels
K = 3                 # kernel size (padding = 1 -> "same")
KK = K * K            # 9
K1 = KK * CIN         # 27  conv1 im2col contraction depth


def nucleus_kernel(x_ref, w1_ref, b1_ref, w2_ref, b2_ref, out_ref):
    # x_ref : (CIN, M)         raw input, channels on sublanes, batch*H*W on lanes (f32)
    # w1_ref: (CMID, K1)       conv1 weights, columns ordered (dy, dx, c)  (bf16)
    # b1_ref: (CMID, 1)        f32
    # w2_ref: (KK, COUT, CMID) conv2 weights, one (1, 16) slab per tap     (bf16)
    # b2_ref: (COUT, 1)        f32
    # out_ref:(COUT, M)        lane-dense sigmoid mask                     (f32)
    M = x_ref.shape[1]

    # Per-lane pixel coordinates within each image (lane axis = batch*H*W).
    q = jax.lax.broadcasted_iota(jnp.int32, (1, M), 1)
    p = q & (HW - 1)          # flat pixel index within the image
    xc = p & (W - 1)          # column within the row

    def tap_mask(dy, dx):
        # 1.0 where this tap's source pixel (y+dy-1, x+dx-1) lies inside the image,
        # None for the centre tap (always valid).  Masks also zero lanes whose roll
        # wrapped across image / block boundaries.
        m = None
        if dy == 0:
            m = p >= W
        elif dy == 2:
            m = p < HW - W
        if dx == 0:
            mx = xc >= 1
            m = mx if m is None else m & mx
        elif dx == 2:
            mx = xc < W - 1
            m = mx if m is None else m & mx
        return None if m is None else m.astype(jnp.float32)   # (1, M)

    x = x_ref[...]            # (CIN, M) f32

    # -------- conv1: in-kernel im2col (roll + mask) -> ONE MXU dot + bias + ReLU ------
    cols = []
    for t in range(KK):
        dy, dx = t // K, t % K
        s = (dy - 1) * W + (dx - 1)                 # flat offset of this tap's source
        xs = x if s == 0 else pltpu.roll(x, shift=(-s) % M, axis=1)
        m = tap_mask(dy, dx)
        if m is not None:
            xs = xs * m                             # mask the 3-sublane operand (cheap)
        cols.append(xs)
    p1 = jnp.concatenate(cols, axis=0).astype(jnp.bfloat16)          # (27, M) bf16
    mid = jnp.dot(w1_ref[...], p1, preferred_element_type=jnp.float32)
    mid = jnp.maximum(mid + b1_ref[...], 0.0)                        # (16, M) f32

    # -------- conv2: per-tap accumulating dots, mask applied to the (1, M) result -----
    acc = None
    for t in range(KK):
        dy, dx = t // K, t % K
        s = (dy - 1) * W + (dx - 1)
        ms = mid if s == 0 else pltpu.roll(mid, shift=(-s) % M, axis=1)
        c = jnp.dot(w2_ref[t], ms.astype(jnp.bfloat16),
                    preferred_element_type=jnp.float32)              # (1, M) f32
        m = tap_mask(dy, dx)
        if m is not None:
            c = c * m
        acc = c if acc is None else acc + c
    out_ref[...] = jax.nn.sigmoid(acc + b2_ref[...])                 # lane-dense store


def nucleus_extractor(x_nchw, w1, b1, w2, b2, *, batch_block=64):
    """x_nchw: (N, 3, H, W); w1: (16, 3, 3, 3); b1: (16,); w2: (1, 16, 3, 3); b2: (1,).
    Returns (N, 1, H, W) sigmoid mask (matches the PyTorch module)."""
    N = x_nchw.shape[0]
    # >= 2 grid blocks whenever N >= 2 so the "parallel" axis feeds both v7x TCs.
    b_blk = max(1, min(batch_block, -(-N // 2)))
    n_blocks = -(-N // b_blk)
    n_pad = n_blocks * b_blk
    m_tile = b_blk * HW
    m_total = n_pad * HW

    x = x_nchw.astype(jnp.float32)
    if n_pad != N:
        x = jnp.pad(x, ((0, n_pad - N), (0, 0), (0, 0), (0, 0)))
    # Lane-dense raw input: channels on sublanes, (batch, y, x) on lanes.
    x_cm = jnp.transpose(x, (1, 0, 2, 3)).reshape(CIN, m_total)      # (3, n_pad*256)

    # conv1 weights flattened with column order (dy, dx, c) to match the in-kernel
    # im2col row order; conv2 weights as one (1, 16) slab per tap (dy, dx).
    w1f = jnp.transpose(w1, (0, 2, 3, 1)).reshape(CMID, K1).astype(jnp.bfloat16)
    b1f = b1.reshape(CMID, 1).astype(jnp.float32)
    w2t = jnp.transpose(w2, (2, 3, 0, 1)).reshape(KK, COUT, CMID).astype(jnp.bfloat16)
    b2f = b2.reshape(COUT, 1).astype(jnp.float32)

    out = pl.pallas_call(
        nucleus_kernel,
        out_shape=jax.ShapeDtypeStruct((COUT, m_total), jnp.float32),
        grid_spec=pltpu.PrefetchScalarGridSpec(
            num_scalar_prefetch=0,
            grid=(n_blocks,),
            in_specs=[
                pl.BlockSpec((CIN, m_tile), lambda b: (0, b)),
                pl.BlockSpec((CMID, K1), lambda b: (0, 0)),
                pl.BlockSpec((CMID, 1), lambda b: (0, 0)),
                pl.BlockSpec((KK, COUT, CMID), lambda b: (0, 0, 0)),
                pl.BlockSpec((COUT, 1), lambda b: (0, 0)),
            ],
            out_specs=pl.BlockSpec((COUT, m_tile), lambda b: (0, b)),
        ),
        compiler_params=pltpu.CompilerParams(
            dimension_semantics=("parallel",)),
    )(x_cm, w1f, b1f, w2t, b2f)

    # (1, n_pad*H*W) -> (n_pad, 1, H, W) -> drop batch padding.
    return out.reshape(n_pad, COUT, H, W)[:N]


def _reference(x, w1, b1, w2, b2):
    """Pure-JAX f32 reference (same semantics as the PyTorch module)."""
    y = jax.lax.conv_general_dilated(
        x, w1, window_strides=(1, 1), padding="SAME",
        dimension_numbers=("NCHW", "OIHW", "NCHW"))
    y = jax.nn.relu(y + b1.reshape(1, CMID, 1, 1))
    z = jax.lax.conv_general_dilated(
        y, w2, window_strides=(1, 1), padding="SAME",
        dimension_numbers=("NCHW", "OIHW", "NCHW"))
    return jax.nn.sigmoid(z + b2.reshape(1, COUT, 1, 1))


if __name__ == "__main__":
    key = jax.random.PRNGKey(0)
    kx, k1, k2, k3, k4 = jax.random.split(key, 5)

    # Small, deterministic synthetic input + parameters (PyTorch param shapes).
    x = jax.random.normal(kx, (2, CIN, H, W), jnp.float32)        # (N, 3, 16, 16)
    w1 = jax.random.normal(k1, (CMID, CIN, K, K), jnp.float32) * 0.1
    b1 = jax.random.normal(k2, (CMID,), jnp.float32) * 0.1
    w2 = jax.random.normal(k3, (COUT, CMID, K, K), jnp.float32) * 0.1
    b2 = jax.random.normal(k4, (COUT,), jnp.float32) * 0.1

    mask = jax.block_until_ready(nucleus_extractor(x, w1, b1, w2, b2))
    assert mask.shape == (2, 1, H, W), mask.shape

    ref = _reference(x, w1, b1, w2, b2)
    err = float(jnp.max(jnp.abs(mask - ref)))
    # bf16 MXU operands -> relaxed tolerance vs the pure-f32 reference.
    assert err < 2e-2, err

    print("KERNEL_OK")
</pallas_src>

<mosaic_0001>
module attributes {stable_mosaic.version = 11 : i64} {
  func.func @nucleus_kernel(%arg0: i32, %arg1: memref<3x256xf32, #tpu.memory_space<vmem>>, %arg2: memref<16x27xbf16, #tpu.memory_space<vmem>>, %arg3: memref<16x1xf32, #tpu.memory_space<vmem>>, %arg4: memref<9x1x16xbf16, #tpu.memory_space<vmem>>, %arg5: memref<1x1xf32, #tpu.memory_space<vmem>>, %arg6: memref<1x256xf32, #tpu.memory_space<vmem>>) attributes {dimension_semantics = [#tpu.dimension_semantics<parallel>], iteration_bounds = array<i64: 2>, scalar_prefetch = 0 : i64, scratch_operands = 0 : i64, tpu.core_type = #tpu.core_type<tc>, window_params = [{transform_indices = @transform_0, window_bounds = array<i64: 3, 256>}, {pipeline_mode = #tpu.pipeline_mode<synchronous>, transform_indices = @transform_1, window_bounds = array<i64: 16, 27>}, {pipeline_mode = #tpu.pipeline_mode<synchronous>, transform_indices = @transform_2, window_bounds = array<i64: 16, 1>}, {pipeline_mode = #tpu.pipeline_mode<synchronous>, transform_indices = @transform_3, window_bounds = array<i64: 9, 1, 16>}, {pipeline_mode = #tpu.pipeline_mode<synchronous>, transform_indices = @transform_4, window_bounds = array<i64: 1, 1>}, {transform_indices = @transform_5, window_bounds = array<i64: 1, 256>}]} {
    %0 = tpu.iota {dimensions = array<i32: 1>} : vector<1x256xi32>
    %c255_i32 = arith.constant 255 : i32
    %1 = vector.broadcast %c255_i32 : i32 to vector<1x256xi32>
    %2 = arith.andi %0, %1 : vector<1x256xi32>
    %c15_i32 = arith.constant 15 : i32
    %3 = vector.broadcast %c15_i32 : i32 to vector<1x256xi32>
    %4 = arith.andi %2, %3 : vector<1x256xi32>
    %c0 = arith.constant 0 : index
    %c0_0 = arith.constant 0 : index
    %5 = vector.load %arg1[%c0, %c0_0] : memref<3x256xf32, #tpu.memory_space<vmem>>, vector<3x256xf32>
    %c17_i32 = arith.constant 17 : i32
    %6 = tpu.dynamic_rotate %5 by %c17_i32 dim 1 : vector<3x256xf32>, i32 -> vector<3x256xf32>
    %c16_i32 = arith.constant 16 : i32
    %7 = vector.broadcast %c16_i32 : i32 to vector<1x256xi32>
    %8 = arith.cmpi sge, %2, %7 : vector<1x256xi32>
    %c1_i32 = arith.constant 1 : i32
    %9 = vector.broadcast %c1_i32 : i32 to vector<1x256xi32>
    %10 = arith.cmpi sge, %4, %9 : vector<1x256xi32>
    %11 = arith.andi %8, %10 : vector<1x256xi1>
    %12 = arith.extui %11 : vector<1x256xi1> to vector<1x256xi32>
    %13 = arith.sitofp %12 : vector<1x256xi32> to vector<1x256xf32>
    %14 = vector.broadcast %13 : vector<1x256xf32> to vector<3x256xf32>
    %15 = arith.mulf %6, %14 : vector<3x256xf32>
    %c16_i32_1 = arith.constant 16 : i32
    %16 = tpu.dynamic_rotate %5 by %c16_i32_1 dim 1 : vector<3x256xf32>, i32 -> vector<3x256xf32>
    %c16_i32_2 = arith.constant 16 : i32
    %17 = vector.broadcast %c16_i32_2 : i32 to vector<1x256xi32>
    %18 = arith.cmpi sge, %2, %17 : vector<1x256xi32>
    %19 = arith.extui %18 : vector<1x256xi1> to vector<1x256xi32>
    %20 = arith.sitofp %19 : vector<1x256xi32> to vector<1x256xf32>
    %21 = vector.broadcast %20 : vector<1x256xf32> to vector<3x256xf32>
    %22 = arith.mulf %16, %21 : vector<3x256xf32>
    %c15_i32_3 = arith.constant 15 : i32
    %23 = tpu.dynamic_rotate %5 by %c15_i32_3 dim 1 : vector<3x256xf32>, i32 -> vector<3x256xf32>
    %c16_i32_4 = arith.constant 16 : i32
    %24 = vector.broadcast %c16_i32_4 : i32 to vector<1x256xi32>
    %25 = arith.cmpi sge, %2, %24 : vector<1x256xi32>
    %c15_i32_5 = arith.constant 15 : i32
    %26 = vector.broadcast %c15_i32_5 : i32 to vector<1x256xi32>
    %27 = arith.cmpi slt, %4, %26 : vector<1x256xi32>
    %28 = arith.andi %25, %27 : vector<1x256xi1>
    %29 = arith.extui %28 : vector<1x256xi1> to vector<1x256xi32>
    %30 = arith.sitofp %29 : vector<1x256xi32> to vector<1x256xf32>
    %31 = vector.broadcast %30 : vector<1x256xf32> to vector<3x256xf32>
    %32 = arith.mulf %23, %31 : vector<3x256xf32>
    %c1_i32_6 = arith.constant 1 : i32
    %33 = tpu.dynamic_rotate %5 by %c1_i32_6 dim 1 : vector<3x256xf32>, i32 -> vector<3x256xf32>
    %c1_i32_7 = arith.constant 1 : i32
    %34 = vector.broadcast %c1_i32_7 : i32 to vector<1x256xi32>
    %35 = arith.cmpi sge, %4, %34 : vector<1x256xi32>
    %36 = arith.extui %35 : vector<1x256xi1> to vector<1x256xi32>
    %37 = arith.sitofp %36 : vector<1x256xi32> to vector<1x256xf32>
    %38 = vector.broadcast %37 : vector<1x256xf32> to vector<3x256xf32>
    %39 = arith.mulf %33, %38 : vector<3x256xf32>
    %c255_i32_8 = arith.constant 255 : i32
    %40 = tpu.dynamic_rotate %5 by %c255_i32_8 dim 1 : vector<3x256xf32>, i32 -> vector<3x256xf32>
    %c15_i32_9 = arith.constant 15 : i32
    %41 = vector.broadcast %c15_i32_9 : i32 to vector<1x256xi32>
    %42 = arith.cmpi slt, %4, %41 : vector<1x256xi32>
    %43 = arith.extui %42 : vector<1x256xi1> to vector<1x256xi32>
    %44 = arith.sitofp %43 : vector<1x256xi32> to vector<1x256xf32>
    %45 = vector.broadcast %44 : vector<1x256xf32> to vector<3x256xf32>
    %46 = arith.mulf %40, %45 : vector<3x256xf32>
    %c241_i32 = arith.constant 241 : i32
    %47 = tpu.dynamic_rotate %5 by %c241_i32 dim 1 : vector<3x256xf32>, i32 -> vector<3x256xf32>
    %c240_i32 = arith.constant 240 : i32
    %48 = vector.broadcast %c240_i32 : i32 to vector<1x256xi32>
    %49 = arith.cmpi slt, %2, %48 : vector<1x256xi32>
    %c1_i32_10 = arith.constant 1 : i32
    %50 = vector.broadcast %c1_i32_10 : i32 to vector<1x256xi32>
    %51 = arith.cmpi sge, %4, %50 : vector<1x256xi32>
    %52 = arith.andi %49, %51 : vector<1x256xi1>
    %53 = arith.extui %52 : vector<1x256xi1> to vector<1x256xi32>
    %54 = arith.sitofp %53 : vector<1x256xi32> to vector<1x256xf32>
    %55 = vector.broadcast %54 : vector<1x256xf32> to vector<3x256xf32>
    %56 = arith.mulf %47, %55 : vector<3x256xf32>
    %c240_i32_11 = arith.constant 240 : i32
    %57 = tpu.dynamic_rotate %5 by %c240_i32_11 dim 1 : vector<3x256xf32>, i32 -> vector<3x256xf32>
    %c240_i32_12 = arith.constant 240 : i32
    %58 = vector.broadcast %c240_i32_12 : i32 to vector<1x256xi32>
    %59 = arith.cmpi slt, %2, %58 : vector<1x256xi32>
    %60 = arith.extui %59 : vector<1x256xi1> to vector<1x256xi32>
    %61 = arith.sitofp %60 : vector<1x256xi32> to vector<1x256xf32>
    %62 = vector.broadcast %61 : vector<1x256xf32> to vector<3x256xf32>
    %63 = arith.mulf %57, %62 : vector<3x256xf32>
    %c239_i32 = arith.constant 239 : i32
    %64 = tpu.dynamic_rotate %5 by %c239_i32 dim 1 : vector<3x256xf32>, i32 -> vector<3x256xf32>
    %c240_i32_13 = arith.constant 240 : i32
    %65 = vector.broadcast %c240_i32_13 : i32 to vector<1x256xi32>
    %66 = arith.cmpi slt, %2, %65 : vector<1x256xi32>
    %c15_i32_14 = arith.constant 15 : i32
    %67 = vector.broadcast %c15_i32_14 : i32 to vector<1x256xi32>
    %68 = arith.cmpi slt, %4, %67 : vector<1x256xi32>
    %69 = arith.andi %66, %68 : vector<1x256xi1>
    %70 = arith.extui %69 : vector<1x256xi1> to vector<1x256xi32>
    %71 = arith.sitofp %70 : vector<1x256xi32> to vector<1x256xf32>
    %72 = vector.broadcast %71 : vector<1x256xf32> to vector<3x256xf32>
    %73 = arith.mulf %64, %72 : vector<3x256xf32>
    %74 = tpu.concatenate %15, %22, %32, %39, %5, %46, %56, %63, %73 in 0 : vector<3x256xf32>, vector<3x256xf32>, vector<3x256xf32>, vector<3x256xf32>, vector<3x256xf32>, vector<3x256xf32>, vector<3x256xf32>, vector<3x256xf32>, vector<3x256xf32> -> vector<27x256xf32>
    %75 = arith.truncf %74 : vector<27x256xf32> to vector<27x256xbf16>
    %c0_15 = arith.constant 0 : index
    %c0_16 = arith.constant 0 : index
    %76 = vector.load %arg2[%c0_15, %c0_16] : memref<16x27xbf16, #tpu.memory_space<vmem>>, vector<16x27xbf16>
    %cst = arith.constant dense<0.000000e+00> : vector<16x256xf32>
    %77 = tpu.matmul %76, %75, %cst {dimension_numbers = #tpu.dot_dimension_numbers<[1], [0], [0], [1], [0, 0, 1, 1], [], []>} : vector<16x27xbf16>, vector<27x256xbf16>, vector<16x256xf32> -> vector<16x256xf32>
    %c0_17 = arith.constant 0 : index
    %c0_18 = arith.constant 0 : index
    %78 = vector.load %arg3[%c0_17, %c0_18] : memref<16x1xf32, #tpu.memory_space<vmem>>, vector<16x1xf32>
    %79 = vector.broadcast %78 : vector<16x1xf32> to vector<16x256xf32>
    %80 = arith.addf %77, %79 : vector<16x256xf32>
    %cst_19 = arith.constant 0.000000e+00 : f32
    %81 = vector.broadcast %cst_19 : f32 to vector<16x256xf32>
    %82 = arith.maximumf %80, %81 : vector<16x256xf32>
    %c17_i32_20 = arith.constant 17 : i32
    %83 = tpu.dynamic_rotate %82 by %c17_i32_20 dim 1 : vector<16x256xf32>, i32 -> vector<16x256xf32>
    %c0_21 = arith.constant 0 : index
    %c0_22 = arith.constant 0 : index
    %c0_23 = arith.constant 0 : index
    %84 = vector.load %arg4[%c0_21, %c0_22, %c0_23] : memref<9x1x16xbf16, #tpu.memory_space<vmem>>, vector<1x1x16xbf16>
    %85 = vector.shape_cast %84 : vector<1x1x16xbf16> to vector<1x16xbf16>
    %86 = arith.truncf %83 : vector<16x256xf32> to vector<16x256xbf16>
    %cst_24 = arith.constant dense<0.000000e+00> : vector<1x256xf32>
    %87 = tpu.matmul %85, %86, %cst_24 {dimension_numbers = #tpu.dot_dimension_numbers<[1], [0], [0], [1], [0, 0, 1, 1], [], []>} : vector<1x16xbf16>, vector<16x256xbf16>, vector<1x256xf32> -> vector<1x256xf32>
    %c16_i32_25 = arith.constant 16 : i32
    %88 = vector.broadcast %c16_i32_25 : i32 to vector<1x256xi32>
    %89 = arith.cmpi sge, %2, %88 : vector<1x256xi32>
    %c1_i32_26 = arith.constant 1 : i32
    %90 = vector.broadcast %c1_i32_26 : i32 to vector<1x256xi32>
    %91 = arith.cmpi sge, %4, %90 : vector<1x256xi32>
    %92 = arith.andi %89, %91 : vector<1x256xi1>
    %93 = arith.extui %92 : vector<1x256xi1> to vector<1x256xi32>
    %94 = arith.sitofp %93 : vector<1x256xi32> to vector<1x256xf32>
    %95 = arith.mulf %87, %94 : vector<1x256xf32>
    %c16_i32_27 = arith.constant 16 : i32
    %96 = tpu.dynamic_rotate %82 by %c16_i32_27 dim 1 : vector<16x256xf32>, i32 -> vector<16x256xf32>
    %c1 = arith.constant 1 : index
    %c0_28 = arith.constant 0 : index
    %c0_29 = arith.constant 0 : index
    %97 = vector.load %arg4[%c1, %c0_28, %c0_29] : memref<9x1x16xbf16, #tpu.memory_space<vmem>>, vector<1x1x16xbf16>
    %98 = vector.shape_cast %97 : vector<1x1x16xbf16> to vector<1x16xbf16>
    %99 = arith.truncf %96 : vector<16x256xf32> to vector<16x256xbf16>
    %cst_30 = arith.constant dense<0.000000e+00> : vector<1x256xf32>
    %100 = tpu.matmul %98, %99, %cst_30 {dimension_numbers = #tpu.dot_dimension_numbers<[1], [0], [0], [1], [0, 0, 1, 1], [], []>} : vector<1x16xbf16>, vector<16x256xbf16>, vector<1x256xf32> -> vector<1x256xf32>
    %c16_i32_31 = arith.constant 16 : i32
    %101 = vector.broadcast %c16_i32_31 : i32 to vector<1x256xi32>
    %102 = arith.cmpi sge, %2, %101 : vector<1x256xi32>
    %103 = arith.extui %102 : vector<1x256xi1> to vector<1x256xi32>
    %104 = arith.sitofp %103 : vector<1x256xi32> to vector<1x256xf32>
    %105 = arith.mulf %100, %104 : vector<1x256xf32>
    %106 = arith.addf %95, %105 : vector<1x256xf32>
    %c15_i32_32 = arith.constant 15 : i32
    %107 = tpu.dynamic_rotate %82 by %c15_i32_32 dim 1 : vector<16x256xf32>, i32 -> vector<16x256xf32>
    %c2 = arith.constant 2 : index
    %c0_33 = arith.constant 0 : index
    %c0_34 = arith.constant 0 : index
    %108 = vector.load %arg4[%c2, %c0_33, %c0_34] : memref<9x1x16xbf16, #tpu.memory_space<vmem>>, vector<1x1x16xbf16>
    %109 = vector.shape_cast %108 : vector<1x1x16xbf16> to vector<1x16xbf16>
    %110 = arith.truncf %107 : vector<16x256xf32> to vector<16x256xbf16>
    %cst_35 = arith.constant dense<0.000000e+00> : vector<1x256xf32>
    %111 = tpu.matmul %109, %110, %cst_35 {dimension_numbers = #tpu.dot_dimension_numbers<[1], [0], [0], [1], [0, 0, 1, 1], [], []>} : vector<1x16xbf16>, vector<16x256xbf16>, vector<1x256xf32> -> vector<1x256xf32>
    %c16_i32_36 = arith.constant 16 : i32
    %112 = vector.broadcast %c16_i32_36 : i32 to vector<1x256xi32>
    %113 = arith.cmpi sge, %2, %112 : vector<1x256xi32>
    %c15_i32_37 = arith.constant 15 : i32
    %114 = vector.broadcast %c15_i32_37 : i32 to vector<1x256xi32>
    %115 = arith.cmpi slt, %4, %114 : vector<1x256xi32>
    %116 = arith.andi %113, %115 : vector<1x256xi1>
    %117 = arith.extui %116 : vector<1x256xi1> to vector<1x256xi32>
    %118 = arith.sitofp %117 : vector<1x256xi32> to vector<1x256xf32>
    %119 = arith.mulf %111, %118 : vector<1x256xf32>
    %120 = arith.addf %106, %119 : vector<1x256xf32>
    %c1_i32_38 = arith.constant 1 : i32
    %121 = tpu.dynamic_rotate %82 by %c1_i32_38 dim 1 : vector<16x256xf32>, i32 -> vector<16x256xf32>
    %c3 = arith.constant 3 : index
    %c0_39 = arith.constant 0 : index
    %c0_40 = arith.constant 0 : index
    %122 = vector.load %arg4[%c3, %c0_39, %c0_40] : memref<9x1x16xbf16, #tpu.memory_space<vmem>>, vector<1x1x16xbf16>
    %123 = vector.shape_cast %122 : vector<1x1x16xbf16> to vector<1x16xbf16>
    %124 = arith.truncf %121 : vector<16x256xf32> to vector<16x256xbf16>
    %cst_41 = arith.constant dense<0.000000e+00> : vector<1x256xf32>
    %125 = tpu.matmul %123, %124, %cst_41 {dimension_numbers = #tpu.dot_dimension_numbers<[1], [0], [0], [1], [0, 0, 1, 1], [], []>} : vector<1x16xbf16>, vector<16x256xbf16>, vector<1x256xf32> -> vector<1x256xf32>
    %c1_i32_42 = arith.constant 1 : i32
    %126 = vector.broadcast %c1_i32_42 : i32 to vector<1x256xi32>
    %127 = arith.cmpi sge, %4, %126 : vector<1x256xi32>
    %128 = arith.extui %127 : vector<1x256xi1> to vector<1x256xi32>
    %129 = arith.sitofp %128 : vector<1x256xi32> to vector<1x256xf32>
    %130 = arith.mulf %125, %129 : vector<1x256xf32>
    %131 = arith.addf %120, %130 : vector<1x256xf32>
    %c4 = arith.constant 4 : index
    %c0_43 = arith.constant 0 : index
    %c0_44 = arith.constant 0 : index
    %132 = vector.load %arg4[%c4, %c0_43, %c0_44] : memref<9x1x16xbf16, #tpu.memory_space<vmem>>, vector<1x1x16xbf16>
    %133 = vector.shape_cast %132 : vector<1x1x16xbf16> to vector<1x16xbf16>
    %134 = arith.truncf %82 : vector<16x256xf32> to vector<16x256xbf16>
    %cst_45 = arith.constant dense<0.000000e+00> : vector<1x256xf32>
    %135 = tpu.matmul %133, %134, %cst_45 {dimension_numbers = #tpu.dot_dimension_numbers<[1], [0], [0], [1], [0, 0, 1, 1], [], []>} : vector<1x16xbf16>, vector<16x256xbf16>, vector<1x256xf32> -> vector<1x256xf32>
    %136 = arith.addf %131, %135 : vector<1x256xf32>
    %c255_i32_46 = arith.constant 255 : i32
    %137 = tpu.dynamic_rotate %82 by %c255_i32_46 dim 1 : vector<16x256xf32>, i32 -> vector<16x256xf32>
    %c5 = arith.constant 5 : index
    %c0_47 = arith.constant 0 : index
    %c0_48 = arith.constant 0 : index
    %138 = vector.load %arg4[%c5, %c0_47, %c0_48] : memref<9x1x16xbf16, #tpu.memory_space<vmem>>, vector<1x1x16xbf16>
    %139 = vector.shape_cast %138 : vector<1x1x16xbf16> to vector<1x16xbf16>
    %140 = arith.truncf %137 : vector<16x256xf32> to vector<16x256xbf16>
    %cst_49 = arith.constant dense<0.000000e+00> : vector<1x256xf32>
    %141 = tpu.matmul %139, %140, %cst_49 {dimension_numbers = #tpu.dot_dimension_numbers<[1], [0], [0], [1], [0, 0, 1, 1], [], []>} : vector<1x16xbf16>, vector<16x256xbf16>, vector<1x256xf32> -> vector<1x256xf32>
    %c15_i32_50 = arith.constant 15 : i32
    %142 = vector.broadcast %c15_i32_50 : i32 to vector<1x256xi32>
    %143 = arith.cmpi slt, %4, %142 : vector<1x256xi32>
    %144 = arith.extui %143 : vector<1x256xi1> to vector<1x256xi32>
    %145 = arith.sitofp %144 : vector<1x256xi32> to vector<1x256xf32>
    %146 = arith.mulf %141, %145 : vector<1x256xf32>
    %147 = arith.addf %136, %146 : vector<1x256xf32>
    %c241_i32_51 = arith.constant 241 : i32
    %148 = tpu.dynamic_rotate %82 by %c241_i32_51 dim 1 : vector<16x256xf32>, i32 -> vector<16x256xf32>
    %c6 = arith.constant 6 : index
    %c0_52 = arith.constant 0 : index
    %c0_53 = arith.constant 0 : index
    %149 = vector.load %arg4[%c6, %c0_52, %c0_53] : memref<9x1x16xbf16, #tpu.memory_space<vmem>>, vector<1x1x16xbf16>
    %150 = vector.shape_cast %149 : vector<1x1x16xbf16> to vector<1x16xbf16>
    %151 = arith.truncf %148 : vector<16x256xf32> to vector<16x256xbf16>
    %cst_54 = arith.constant dense<0.000000e+00> : vector<1x256xf32>
    %152 = tpu.matmul %150, %151, %cst_54 {dimension_numbers = #tpu.dot_dimension_numbers<[1], [0], [0], [1], [0, 0, 1, 1], [], []>} : vector<1x16xbf16>, vector<16x256xbf16>, vector<1x256xf32> -> vector<1x256xf32>
    %c240_i32_55 = arith.constant 240 : i32
    %153 = vector.broadcast %c240_i32_55 : i32 to vector<1x256xi32>
    %154 = arith.cmpi slt, %2, %153 : vector<1x256xi32>
    %c1_i32_56 = arith.constant 1 : i32
    %155 = vector.broadcast %c1_i32_56 : i32 to vector<1x256xi32>
    %156 = arith.cmpi sge, %4, %155 : vector<1x256xi32>
    %157 = arith.andi %154, %156 : vector<1x256xi1>
    %158 = arith.extui %157 : vector<1x256xi1> to vector<1x256xi32>
    %159 = arith.sitofp %158 : vector<1x256xi32> to vector<1x256xf32>
    %160 = arith.mulf %152, %159 : vector<1x256xf32>
    %161 = arith.addf %147, %160 : vector<1x256xf32>
    %c240_i32_57 = arith.constant 240 : i32
    %162 = tpu.dynamic_rotate %82 by %c240_i32_57 dim 1 : vector<16x256xf32>, i32 -> vector<16x256xf32>
    %c7 = arith.constant 7 : index
    %c0_58 = arith.constant 0 : index
    %c0_59 = arith.constant 0 : index
    %163 = vector.load %arg4[%c7, %c0_58, %c0_59] : memref<9x1x16xbf16, #tpu.memory_space<vmem>>, vector<1x1x16xbf16>
    %164 = vector.shape_cast %163 : vector<1x1x16xbf16> to vector<1x16xbf16>
    %165 = arith.truncf %162 : vector<16x256xf32> to vector<16x256xbf16>
    %cst_60 = arith.constant dense<0.000000e+00> : vector<1x256xf32>
    %166 = tpu.matmul %164, %165, %cst_60 {dimension_numbers = #tpu.dot_dimension_numbers<[1], [0], [0], [1], [0, 0, 1, 1], [], []>} : vector<1x16xbf16>, vector<16x256xbf16>, vector<1x256xf32> -> vector<1x256xf32>
    %c240_i32_61 = arith.constant 240 : i32
    %167 = vector.broadcast %c240_i32_61 : i32 to vector<1x256xi32>
    %168 = arith.cmpi slt, %2, %167 : vector<1x256xi32>
    %169 = arith.extui %168 : vector<1x256xi1> to vector<1x256xi32>
    %170 = arith.sitofp %169 : vector<1x256xi32> to vector<1x256xf32>
    %171 = arith.mulf %166, %170 : vector<1x256xf32>
    %172 = arith.addf %161, %171 : vector<1x256xf32>
    %c239_i32_62 = arith.constant 239 : i32
    %173 = tpu.dynamic_rotate %82 by %c239_i32_62 dim 1 : vector<16x256xf32>, i32 -> vector<16x256xf32>
    %c8 = arith.constant 8 : index
    %c0_63 = arith.constant 0 : index
    %c0_64 = arith.constant 0 : index
    %174 = vector.load %arg4[%c8, %c0_63, %c0_64] : memref<9x1x16xbf16, #tpu.memory_space<vmem>>, vector<1x1x16xbf16>
    %175 = vector.shape_cast %174 : vector<1x1x16xbf16> to vector<1x16xbf16>
    %176 = arith.truncf %173 : vector<16x256xf32> to vector<16x256xbf16>
    %cst_65 = arith.constant dense<0.000000e+00> : vector<1x256xf32>
    %177 = tpu.matmul %175, %176, %cst_65 {dimension_numbers = #tpu.dot_dimension_numbers<[1], [0], [0], [1], [0, 0, 1, 1], [], []>} : vector<1x16xbf16>, vector<16x256xbf16>, vector<1x256xf32> -> vector<1x256xf32>
    %c240_i32_66 = arith.constant 240 : i32
    %178 = vector.broadcast %c240_i32_66 : i32 to vector<1x256xi32>
    %179 = arith.cmpi slt, %2, %178 : vector<1x256xi32>
    %c15_i32_67 = arith.constant 15 : i32
    %180 = vector.broadcast %c15_i32_67 : i32 to vector<1x256xi32>
    %181 = arith.cmpi slt, %4, %180 : vector<1x256xi32>
    %182 = arith.andi %179, %181 : vector<1x256xi1>
    %183 = arith.extui %182 : vector<1x256xi1> to vector<1x256xi32>
    %184 = arith.sitofp %183 : vector<1x256xi32> to vector<1x256xf32>
    %185 = arith.mulf %177, %184 : vector<1x256xf32>
    %186 = arith.addf %172, %185 : vector<1x256xf32>
    %c0_68 = arith.constant 0 : index
    %c0_69 = arith.constant 0 : index
    %187 = vector.load %arg5[%c0_68, %c0_69] : memref<1x1xf32, #tpu.memory_space<vmem>>, vector<1x1xf32>
    %188 = vector.broadcast %187 : vector<1x1xf32> to vector<1x256xf32>
    %189 = arith.addf %186, %188 : vector<1x256xf32>
    %190 = arith.negf %189 : vector<1x256xf32>
    %191 = math.exp %190 : vector<1x256xf32>
    %cst_70 = arith.constant 1.000000e+00 : f32
    %192 = vector.broadcast %cst_70 : f32 to vector<1x256xf32>
    %193 = arith.addf %192, %191 : vector<1x256xf32>
    %194 = arith.divf %192, %193 : vector<1x256xf32>
    %c0_71 = arith.constant 0 : index
    %c0_72 = arith.constant 0 : index
    %195 = vector.load %arg6[%c0_71, %c0_72] : memref<1x256xf32, #tpu.memory_space<vmem>>, vector<1x256xf32>
    tpu.vector_store %arg6[%c0_71, %c0_72], %194 {strides = array<i32>} : memref<1x256xf32, #tpu.memory_space<vmem>>, vector<1x256xf32>,
    return
  }
  func.func @transform_0(%arg0: i32) -> (i32, i32) {
    %c0_i32 = arith.constant 0 : i32
    %c0_i32_0 = arith.constant 0 : i32
    return %c0_i32, %arg0 : i32, i32
  }
  func.func @transform_1(%arg0: i32) -> (i32, i32) {
    %c0_i32 = arith.constant 0 : i32
    %c0_i32_0 = arith.constant 0 : i32
    %c0_i32_1 = arith.constant 0 : i32
    return %c0_i32, %c0_i32_0 : i32, i32
  }
  func.func @transform_2(%arg0: i32) -> (i32, i32) {
    %c0_i32 = arith.constant 0 : i32
    %c0_i32_0 = arith.constant 0 : i32
    %c0_i32_1 = arith.constant 0 : i32
    return %c0_i32, %c0_i32_0 : i32, i32
  }
  func.func @transform_3(%arg0: i32) -> (i32, i32, i32) {
    %c0_i32 = arith.constant 0 : i32
    %c0_i32_0 = arith.constant 0 : i32
    %c0_i32_1 = arith.constant 0 : i32
    %c0_i32_2 = arith.constant 0 : i32
    return %c0_i32, %c0_i32_0, %c0_i32_1 : i32, i32, i32
  }
  func.func @transform_4(%arg0: i32) -> (i32, i32) {
    %c0_i32 = arith.constant 0 : i32
    %c0_i32_0 = arith.constant 0 : i32
    %c0_i32_1 = arith.constant 0 : i32
    return %c0_i32, %c0_i32_0 : i32, i32
  }
  func.func @transform_5(%arg0: i32) -> (i32, i32) {
    %c0_i32 = arith.constant 0 : i32
    %c0_i32_0 = arith.constant 0 : i32
    return %c0_i32, %arg0 : i32, i32
  }
}

</mosaic_0001>

<bundles_post_ra>
// kernel: tpu_custom_call.1
= control target key start
LH: loop header
LB: loop body
LE: loop exit
PB: predicated region body
PF: predicated region fallthrough
CT: control target
= control target key end

     0   :  { %s1825_s0 = inlined_call_operand.vmem [shape: f32[3,512], index: 0, kind: input, shape index: {}]   ;;  %s1826_s1 = inlined_call_operand.vmem [shape: bf16[16,27], index: 1, kind: input, shape index: {}]   ;;  %s1827_s2 = inlined_call_operand.vmem [shape: f32[16,1], index: 2, kind: input, shape index: {}]   ;;  %s1828_s3 = inlined_call_operand.vmem [shape: bf16[9,1,16], index: 3, kind: input, shape index: {}]   ;;  %s1829_s4 = inlined_call_operand.<no memory space> [shape: f32[1,1], index: 4, kind: input, shape index: {}]   ;;  %s1830_s5 = inlined_call_operand.hbm [shape: f32[1,512], index: 5, kind: output, shape index: {}]  }
   0x1   :  { %v10_v0 = vstv %s1829_s4 }
   0x2   :  { %11 = vst [vmem:[#allocation2] sm:$0x1] %v10_v0 }
   0x3   :  { %12 = vsyncpa [#allocation4], 0 }
   0x4   :  { %14 = vsyncpa [#allocation4 + $0x1], 0  ;;  %s1394_s20 = smov 0   ;;  %s1396_s21 = smov 0  }
   0x5   :  { %s1398_s22 = smov 0   ;;  %s1400_s23 = smov 0  }
   0x6 LB: > { %s1084_s4 = sadd.s32 4294967295, %s1348_s23   ;;  %s1085_s24 = sadd.s32 4294967294, %s1348_s23   ;;  %s1348_s23 = sphi %s1400_s23, %s1844_s23   ;;  %s1344_s22 = sphi %s1398_s22, %s1843_s22   ;;  %s1340_s21 = sphi %s1396_s21, %s1842_s21   ;;  %s1336_s20 = sphi %s1394_s20, %s1841_s20  }
   0x7   : > { %s1417_s25 = sadd.s32 1, %s1348_s23   ;;  %s137_s26 = sadd.s32 1, %s1344_s22 }
   0x8   : > { %s134_s27 = ssub.s32 %s1348_s23, %s1417_s25  ;;  %p147_p0 = scmp.ne.s32.totalorder %s1344_s22, %s1340_s21 }
   0x9   : > { %p135_p1 = scmp.eq.s32.totalorder %s134_s27, 0  ;;  %p148_p2 = scmp.eq.s32.totalorder %s1084_s4, 1 }
   0xa   : > { %p153_p3 = scmp.ne.s32.totalorder %s1340_s21, %s1336_s20  ;;  %p154_p4 = scmp.eq.s32.totalorder %s1085_s24, 1 }
   0xb   : > { %s1427_s28 = scalar_select %p135_p1, %s1344_s22, %s137_s26  }
   0xc   : > { %p1429_p5 = por %p148_p2, %p147_p0  ;;  %p1433_p6 = por %p154_p4, %p153_p3 }
   0xd   : > { %p1088_p7 = scmp.ge.s32.totalorder %s1348_s23, 1  ;;  %p193_p8 = scmp.lt.s32.totalorder %s1348_s23, 3 }
   0xf   : > { %p194_p9 = pnand %p1088_p7, %p193_p8 }
  0x10   : > { %s1439_s6 = sshll.u32 (!%p194_p9), %s1084_s4, 1  ;;  %s1350_s12 = smov (!%p194_p9), 16  }
  0x11   : > { %197 = sbr.rel (%p194_p9) target bundleno = 728 (0x2d8), region = 40  ;;  %p222_p10 = scmp.lt.s32.totalorder (!%p194_p9), %s1439_s6, 3 }
  0x12   : > { %s1351_s13 = smov (!%p194_p9), 15   ;;  %s1352_s14 = smov (!%p194_p9), 1  }
  0x13   : > { %s1353_s15 = smov (!%p194_p9), 127   ;;  %s1354_s16 = smov (!%p194_p9), 113  }
  0x14   : > { %s1355_s17 = smov (!%p194_p9), 112   ;;  %s1356_s18 = smov (!%p194_p9), 111  }
  0x15   : > { %s1357_s19 = smov (!%p194_p9), 17   ;;  %s218_s10 = sand.u32 (!%p194_p9), 1, %s1340_s21  }
  0x16   : > { %s223_s7 = scalar_select %p222_p10, %s1439_s6, 3  ;;  %v229_v20 = vlaneseq  ;;  %v467_v38 = vld [vmem:[%s1827_s2] sm:$0xff]  ;;  %v468_v39 = vld [vmem:[%s1827_s2 + $0x8] sm:$0xff]  ;;  %v1358_v40 = vmov 0   ;;  %v1359_v41 = vmov 0.0   ;;  %vm455_vm14 = vcmask 1041408  }
  0x17   : > { %1195 = vset.pattern.permute.xlu1 %v1358_v40  ;;  %1196 = vset.pattern.permute.xlu2 %v1358_v40  ;;  %vm458_vm15 = vcmask 1044480   ;;  %s1306_s26 = scalar_lea.hbm %s1830_s5, 4 }
  0x18   : > { %s1091_s8 = sshll.u32 %s223_s7, 2  ;;  %v1467_v23 = vand.u32 127, %v229_v20  ;;  %1277 = vset.pattern.permute.xlu0 %v1358_v40 }
  0x19   : > { %s225_s11 = scalar_lea.vmem %s1825_s0, %s1091_s8 }
  0x1a   : > { %v236_v1 = vld [vmem:[%s225_s11] sm:$0x77]  ;;  %v231_v25 = vadd.s32 128, %v1467_v23  ;;  %v232_v29 = vand.u32 255, %v1467_v23  ;;  %vm329_vm3 = vcmp.lt.s32.totalorder %v1467_v23, 127  ;;  %vm369_vm7 = vcmp.lt.s32.totalorder %v1467_v23, 112 }
  0x1b   : > { %238 = vst [vmem:[#allocation1] ss:$2 sm:$0xff] %v236_v1  ;;  %vm289_vm8 = vcmp.lt.s32.totalorder %v1467_v23, 15  ;;  %vm347_vm10 = vcmp.lt.s32.totalorder %v1467_v23, 113  ;;  %vm311_vm12 = vcmp.lt.s32.totalorder %v1467_v23, 1  ;;  %s1781_s11 = sshll.u32 %s218_s10, 1 }
  0x1c   : > { %v233_v27 = vand.u32 255, %v231_v25  ;;  %v1471_v32 = vand.u32 15, %v232_v29  ;;  %vm1477_vm2 = vcmp.ge.s32.totalorder %v232_v29, 16 }
  0x1e   : > { %v235_v30 = vand.u32 15, %v233_v27  ;;  %vm1473_vm0 = vcmp.lt.s32.totalorder %v233_v27, 240  ;;  %vm292_vm5 = vcmp.lt.s32.totalorder %v1471_v32, 15  ;;  %vm252_vm6 = vcmp.ge.s32.totalorder %v1471_v32, 1 }
  0x1f   : > { %v1503_v42 = vsel %vm292_vm5, 1.0, %v1359_v41  ;;  %vm294_vm11 = vmand %vm1477_vm2, %vm292_vm5  ;;  %v1522_v46 = vsel %vm252_vm6, 1.0, %v1359_v41  ;;  %v1527_v48 = vsel %vm1473_vm0, 1.0, %v1359_v41  ;;  %vm446_vm5 = vcmask 1040384  }
  0x20   : > { %vm253_vm1 = vcmp.ge.s32.totalorder %v235_v30, 1  ;;  %vm293_vm9 = vcmp.lt.s32.totalorder %v235_v30, 15  ;;  %v1550_v58 = vsel %vm294_vm11, 1.0, %v1359_v41  ;;  %vm247_vm11 = vcmp.lt.s32.totalorder %v1467_v23, 17 }
  0x21   : > { %vm1485_vm4 = vmand %vm1473_vm0, %vm253_vm1  ;;  %v1533_v50 = vsel %vm293_vm9, 1.0, %v1359_v41  ;;  %v1556_v60 = vsel %vm253_vm1, 1.0, %v1359_v41  ;;  %vm387_vm1 = vcmp.lt.s32.totalorder %v1467_v23, 111 }
  0x22   : > { %v239_v2 = vld.sshfl [vmem:[#allocation1] sm:$0xff pattern:$0x75316420]  ;;  %v240_v3 = vld.sshfl [vmem:[#allocation1 + $0x8] sm:$0xff pattern:$0x75316420]  ;;  %vm391_vm13 = vmand %vm1473_vm0, %vm293_vm9 }
  0x23   : > { %262 = vst [vmem:[#allocation1] ss:$2 sm:$0xff] %v236_v1  ;;  %v1512_v45 = vsel %vm1485_vm4, 1.0, %v1359_v41  ;;  %vm443_vm0 = vcmask 1045504   ;;  %vm254_vm4 = vmand %vm1477_vm2, %vm252_vm6  ;;  %vm271_vm9 = vcmp.lt.s32.totalorder %v1467_v23, 16  ;;  %vm440_vm6 = vcmask 1042432  }
  0x24   : > { %v1609_v32 = vsel %vm254_vm4, 1.0, %v1359_v41  ;;  %v1135_v23 = vld [vmem:[%s1828_s3 + $0x8] sm:$0x1] }
  0x2a   : > { %v263_v4 = vld.sshfl [vmem:[#allocation1] sm:$0xff pattern:$0x75316420]  ;;  %v264_v5 = vld.sshfl [vmem:[#allocation1 + $0x8] sm:$0xff pattern:$0x75316420] }
  0x2b   : > { %267 = vrot.lane.b32.xlu0 %v263_v4, %s1350_s12  ;;  %280 = vst [vmem:[#allocation1] ss:$2 sm:$0xff] %v236_v1 }
  0x32   : > { %v282_v6 = vld.sshfl [vmem:[#allocation1 + $0x8] sm:$0xff pattern:$0x75316420]  ;;  %v281_v7 = vld.sshfl [vmem:[#allocation1] sm:$0xff pattern:$0x75316420] }
  0x33   : > { %287 = vrot.lane.b32.xlu0 %v282_v6, %s1351_s13  ;;  %302 = vst [vmem:[#allocation1] ss:$2 sm:$0xff] %v236_v1  ;;  %285 = vrot.lane.b32.xlu2 %v281_v7, %s1351_s13 }
  0x3a   : > { %v303_v8 = vld.sshfl [vmem:[#allocation1] sm:$0xff pattern:$0x75316420]  ;;  %v304_v9 = vld.sshfl [vmem:[#allocation1 + $0x8] sm:$0xff pattern:$0x75316420] }
  0x3b   : > { %307 = vrot.lane.b32.xlu1 %v303_v8, %s1352_s14  ;;  %320 = vst [vmem:[#allocation1] ss:$2 sm:$0xff] %v236_v1  ;;  %309 = vrot.lane.b32.xlu2 %v304_v9, %s1352_s14  ;;  %v1578_v9 = vsel %vm391_vm13, 1.0, %v1359_v41  ;;  %vm449_vm13 = vcmask 1043456  }
  0x42   : > { %v321_v10 = vld.sshfl [vmem:[#allocation1] sm:$0xff pattern:$0x75316420]  ;;  %v322_v11 = vld.sshfl [vmem:[#allocation1 + $0x8] sm:$0xff pattern:$0x75316420] }
  0x43   : > { %325 = vrot.lane.b32.xlu0 %v321_v10, %s1353_s15  ;;  %338 = vst [vmem:[#allocation1] ss:$2 sm:$0xff] %v236_v1 }
  0x4a   : > { %v339_v12 = vld.sshfl [vmem:[#allocation1] sm:$0xff pattern:$0x75316420]  ;;  %v340_v13 = vld.sshfl [vmem:[#allocation1 + $0x8] sm:$0xff pattern:$0x75316420] }
  0x4b   : > { %327 = vrot.lane.b32.xlu0 %v322_v11, %s1353_s15  ;;  %343 = vrot.lane.b32.xlu1 %v339_v12, %s1354_s16  ;;  %360 = vst [vmem:[#allocation1] ss:$2 sm:$0xff] %v236_v1 }
  0x52   : > { %v361_v14 = vld.sshfl [vmem:[#allocation1] sm:$0xff pattern:$0x75316420]  ;;  %v362_v15 = vld.sshfl [vmem:[#allocation1 + $0x8] sm:$0xff pattern:$0x75316420] }
  0x53   : > { %345 = vrot.lane.b32.xlu1 %v340_v13, %s1354_s16  ;;  %378 = vst [vmem:[#allocation1] ss:$2 sm:$0xff] %v236_v1  ;;  %365 = vrot.lane.b32.xlu2 %v361_v14, %s1355_s17  ;;  %v1360_v13 = vmov 65535  }
  0x54   : > { %v488_v14 = vsel %vm458_vm15, 4294967295, %v1360_v13 }
  0x5a   : > { %v380_v16 = vld.sshfl [vmem:[#allocation1 + $0x8] sm:$0xff pattern:$0x75316420]  ;;  %v379_v17 = vld.sshfl [vmem:[#allocation1] sm:$0xff pattern:$0x75316420] }
  0x5b   : > { %385 = vrot.lane.b32.xlu1 %v380_v16, %s1356_s18  ;;  %383 = vrot.lane.b32.xlu0 %v379_v17, %s1356_s18  ;;  %417 = vst [vmem:[#allocation1 + $0x1] ss:$2 sm:$0xff] %v236_v1 }
  0x5c   : > { %367 = vrot.lane.b32.xlu2 %v362_v15, %s1355_s17 }
  0x63   : > { %269 = vrot.lane.b32.xlu1 %v264_v5, %s1350_s12  ;;  %245 = vrot.lane.b32.xlu0 %v240_v3, %s1357_s19 }
  0x64   : > { %243 = vrot.lane.b32.xlu2 %v239_v2, %s1357_s19 }
  0x6b   : > { %471 = vperm.xlu1 %1195, %v467_v38  }
  0x6c   : > { %476 = vperm.xlu2 %1196, %v468_v39   ;;  %v1606_v39 = vsel %vm1477_vm2, 1.0, %v1359_v41  ;;  %vm484_vm2 = vcmask 220160  }
  0x8d   : > { %v286_v19 = vpop.permute.xlu2 %285 }
  0x95   : > { %v1464_v22 = vpop.permute.xlu2 %309 }
  0x9d   : > { %v1462_v18 = vpop.permute.xlu0 %267 }
  0xa5   : > { %v288_v21 = vpop.permute.xlu0 %287 }
  0xa6   : > { %v290_v51 = vsel %vm289_vm8, %v286_v19, %v288_v21  ;;  %v291_v59 = vsel %vm289_vm8, %v288_v21, %v286_v19 }
  0xa7   : > { %v1568_v2 = vmul.f32 %v1533_v50, %v290_v51  ;;  %v300_v19 = vmul.f32 %v1550_v58, %v291_v59  ;;  %v419_v51 = vld.sshfl [vmem:[#allocation1 + $0x8] sm:$0xff pattern:$0x75316420] }
  0xad   : > { %v308_v24 = vpop.permute.xlu1 %307  ;;  %v366_v28 = vpop.permute.xlu2 %365 }
  0xae   : > { %v312_v62 = vsel %vm311_vm12, %v308_v24, %v1464_v22  ;;  %v313_v3 = vsel %vm311_vm12, %v1464_v22, %v308_v24 }
  0xaf   : > { %v319_v6 = vmul.f32 %v1556_v60, %v312_v62  ;;  %v318_v24 = vmul.f32 %v1522_v46, %v313_v3 }
  0xb1   : > { %v413_v29 = vrot.slane %v319_v6, 7  ;;  %v412_v38 = vrot.slane %v318_v24, 7 }
  0xb5   : > { %v326_v26 = vpop.permute.xlu0 %325 }
  0xb6   : > { %v368_v37 = vpop.permute.xlu2 %367 }
  0xb7   : > { %v371_v49 = vsel %vm369_vm7, %v368_v37, %v366_v28  ;;  %v370_v1 = vsel %vm369_vm7, %v366_v28, %v368_v37  ;;  %v407_v28 = vrot.slane %v1568_v2, 2  ;;  %v406_v37 = vrot.slane %v300_v19, 2 }
  0xb8   : > { %v377_v61 = vmul.f32 %v1527_v48, %v371_v49  ;;  %v436_v7 = vrot.slane %v370_v1, 3 }
  0xb9   : > { %v447_v59 = vsel %vm446_vm5, %v406_v37, %v412_v38 }
  0xba   : > { %v437_v8 = vrot.slane %v377_v61, 3 }
  0xbd   : > { %v344_v31 = vpop.permute.xlu1 %343  ;;  %v328_v35 = vpop.permute.xlu0 %327 }
  0xbe   : > { %v330_v43 = vsel %vm329_vm3, %v326_v26, %v328_v35  ;;  %v331_v44 = vsel %vm329_vm3, %v328_v35, %v326_v26  ;;  %v489_v26 = vsel %vm443_vm0, %v488_v14, 0  ;;  %v244_v33 = vpop.permute.xlu2 %243 }
  0xbf   : > { %v1542_v54 = vmul.f32 %v1503_v42, %v330_v43  ;;  %v1545_v55 = vmul.f32 %v1533_v50, %v331_v44  ;;  %v448_v44 = vsel %vm446_vm5, %v407_v28, %v413_v29  ;;  %v953_v29 = vld [vmem:[#allocation2] sm:$0x1] }
  0xc0   : > { %v451_v62 = vsel %vm449_vm13, %v448_v44, %v419_v51 }
  0xc1   : > { %v424_v4 = vrot.slane %v1542_v54, 1  ;;  %v425_v5 = vrot.slane %v1545_v55, 1 }
  0xc5   : > { %v346_v47 = vpop.permute.xlu1 %345 }
  0xc6   : > { %v348_v52 = vsel %vm347_vm10, %v344_v31, %v346_v47  ;;  %v349_v53 = vsel %vm347_vm10, %v346_v47, %v344_v31  ;;  %v477_v13 = vpop.permute.xlu2 %476 }
  0xc7   : > { %v358_v56 = vmul.f32 %v1522_v46, %v348_v52  ;;  %v359_v57 = vmul.f32 %v1512_v45, %v349_v53 }
  0xc9   : > { %v430_v63 = vrot.slane %v358_v56, 6  ;;  %v431_v0 = vrot.slane %v359_v57, 6  ;;  %v418_v57 = vld.sshfl [vmem:[#allocation1] sm:$0xff pattern:$0x75316420] }
  0xca   : > { %v450_v3 = vsel %vm449_vm13, %v447_v59, %v418_v57 }
  0xcb   : > { %v456_v12 = vsel %vm455_vm14, %v424_v4, %v430_v63  ;;  %v457_v15 = vsel %vm455_vm14, %v425_v5, %v431_v0  ;;  %vm452_vm14 = vcmask 1046528  }
  0xcc   : > { %v459_v25 = vsel %vm458_vm15, %v456_v12, %v436_v7  ;;  %v460_v27 = vsel %vm458_vm15, %v457_v15, %v437_v8  ;;  %v454_v0 = vsel %vm452_vm14, %v451_v62, %v425_v5  ;;  %v453_v7 = vsel %vm452_vm14, %v450_v3, %v424_v4  ;;  %v1144_v8 = vld [vmem:[%s1826_s1] sm:$0xff] }
  0xcd   : > { %v386_v10 = vpop.permute.xlu1 %385  ;;  %v384_v11 = vpop.permute.xlu0 %383  ;;  %vm543_vm15 = vcmask 130048  }
  0xce   : > { %v388_v16 = vsel %vm387_vm1, %v384_v11, %v386_v10  ;;  %v389_v17 = vsel %vm387_vm1, %v386_v10, %v384_v11 }
  0xcf   : > { %v396_v21 = vmul.f32 %v1503_v42, %v388_v16  ;;  %v397_v22 = vmul.f32 %v1578_v9, %v389_v17 }
  0xd1   : > { %v463_v30 = vpack.c.bf16 %v396_v21, %v459_v25  ;;  %v464_v31 = vpack.c.bf16 %v397_v22, %v460_v27 }
  0xd3   : > { %v491_v35 = vand.u32 %v489_v26, %v463_v30  ;;  %v494_v36 = vand.u32 %v489_v26, %v464_v31 }
  0xd5   : > { %v270_v40 = vpop.permute.xlu1 %269  ;;  %502 = vmatpush.bf16.msra.mxu0 %v491_v35  ;;  %516 = vmatpush.bf16.msra.mxu1 %v494_v36  ;;  %v246_v43 = vpop.permute.xlu0 %245 }
  0xd6   : > { %v272_v47 = vsel %vm271_vm9, %v1462_v18, %v270_v40  ;;  %v273_v34 = vsel %vm271_vm9, %v270_v40, %v1462_v18  ;;  %v248_v41 = vsel %vm247_vm11, %v244_v33, %v246_v43  ;;  %v249_v49 = vsel %vm247_vm11, %v246_v43, %v244_v33 }
  0xd7   : > { %v278_v52 = vmul.f32 %v1606_v39, %v273_v34  ;;  %v401_v53 = vrot.slane %v272_v47, 5  ;;  %v260_v55 = vmul.f32 %v1609_v32, %v249_v49  ;;  %v261_v56 = vmul.f32 %v1556_v60, %v248_v41 }
  0xd9   : > { %v400_v61 = vrot.slane %v278_v52, 5  ;;  %v442_v18 = vsel %vm440_vm6, %v261_v56, %v401_v53  ;;  %v540_v52 = vld [vmem:[%s1828_s3] sm:$0x1] }
  0xda   : > { %v445_v63 = vsel %vm443_vm0, %v442_v18, %v407_v28 }
  0xdb   : > { %v462_v1 = vpack.c.bf16 %v454_v0, %v445_v63  ;;  %v441_v2 = vsel %vm440_vm6, %v260_v55, %v400_v61 }
  0xdc   : > { %v444_v6 = vsel %vm443_vm0, %v441_v2, %v406_v37 }
  0xdd   : > { %517 = vmatpush.bf16.msra.mxu1 %v462_v1  ;;  %v461_v10 = vpack.c.bf16 %v453_v7, %v444_v6  ;;  %v472_v12 = vpop.permute.xlu1 %471 }
  0xdf   : > { %503 = vmatpush.bf16.msra.mxu0 %v461_v10 }
  0xe0   : > { %1111 = vmatmul.msk.bf16.vlgmr.msra.gmra.mxu1 %vm484_vm2, %v1144_v8 }
  0xe2   : > { %1110 = vmatmul.msk.bf16.vlgmr.msra.gmra.mxu0 %vm484_vm2, %v1144_v8 }
 0x15d   : > { %v519_v5 = vpop.f32.mrf.mxu1 }
 0x15e   : > { %v520_v14 = vadd.f32 %v519_v5, %v472_v12 }
 0x15f   : > { %v505_v11 = vpop.f32.mrf.mxu0 }
 0x160   : > { %v506_v16 = vadd.f32 %v505_v11, %v472_v12  ;;  %v525_v4 = vmax.f32 %v520_v14, 0.0 }
 0x162   : > { %v524_v22 = vmax.f32 %v506_v16, 0.0 }
 0x165   : > { %v521_v15 = vpop.f32.mrf.mxu1 }
 0x166   : > { %v522_v54 = vadd.f32 %v521_v15, %v477_v13  ;;  %v1117_v15 = vld [vmem:[%s1828_s3 + $0x2] sm:$0x1] }
 0x167   : > { %v507_v17 = vpop.f32.mrf.mxu0 }
 0x168   : > { %v527_v19 = vmax.f32 %v522_v54, 0.0  ;;  %v508_v21 = vadd.f32 %v507_v17, %v477_v13 }
 0x16a   : > { %v526_v24 = vmax.f32 %v508_v21, 0.0  ;;  %v1202_v25 = vpack.i.bf16 %v527_v19, %v525_v4  ;;  %v725_v28 = vpack.c.bf16 %v527_v19, %v525_v4 }
 0x16c   : > { %1203 = vrot.lane.b32.xlu1 %v1202_v25, %s1357_s19  ;;  %v1207_v26 = vpack.i.bf16 %v526_v24, %v524_v22  ;;  %v724_v27 = vpack.c.bf16 %v526_v24, %v524_v22 }
 0x16e   : > { %1208 = vrot.lane.b32.xlu2 %v1207_v26, %s1350_s12  ;;  %1198 = vrot.lane.b32.xlu0 %v1207_v26, %s1357_s19 }
 0x174   : > { %1218 = vrot.lane.b32.xlu1 %v1207_v26, %s1351_s13 }
 0x176   : > { %1223 = vrot.lane.b32.xlu2 %v1202_v25, %s1351_s13  ;;  %1213 = vrot.lane.b32.xlu0 %v1202_v25, %s1350_s12 }
 0x17c   : > { %1233 = vrot.lane.b32.xlu1 %v1202_v25, %s1352_s14 }
 0x17e   : > { %1238 = vrot.lane.b32.xlu2 %v1207_v26, %s1353_s15  ;;  %1228 = vrot.lane.b32.xlu0 %v1207_v26, %s1352_s14  ;;  %s1021_s14 = scalar_lea.hbm %s1830_s5, %s1439_s6  ;;  %s1011_s6 = scalar_lea.sflag [#allocation4], %s218_s10 }
 0x184   : > { %1248 = vrot.lane.b32.xlu1 %v1207_v26, %s1354_s16 }
 0x186   : > { %1253 = vrot.lane.b32.xlu2 %v1202_v25, %s1354_s16  ;;  %1243 = vrot.lane.b32.xlu0 %v1202_v25, %s1353_s15  ;;  %s220_s15 = scalar_lea.vmem [#allocation3], %s1781_s11 }
 0x187   : > { %s1023_s16 = sshll.u32 %s220_s15, 4  ;;  %s1024_s16 = int_to_ptr.vmem [resolvable:$true] %s1023_s16 }
 0x18c   : > { %1263 = vrot.lane.b32.xlu1 %v1202_v25, %s1355_s17 }
 0x18e   : > { %1268 = vrot.lane.b32.xlu2 %v1207_v26, %s1356_s18  ;;  %1258 = vrot.lane.b32.xlu0 %v1207_v26, %s1355_s17  ;;  %s1025_s17 = sshll.u32 %s1021_s14, 4  ;;  %s1026_s17 = int_to_ptr.hbm [resolvable:$true] %s1025_s17 }
 0x194   : > { %956 = vperm.xlu1 %1195, %v953_v29  }
 0x196   : > { %1273 = vrot.lane.b32.xlu0 %v1202_v25, %s1356_s18  ;;  %s1300_s18 = sshra.s32 %s1026_s17, 4  ;;  %s1301_s18 = int_to_ptr.hbm [resolvable:$true] %s1300_s18 }
 0x197   : > { %s1302_s19 = scalar_lea.hbm %s1301_s18, 2  ;;  %p1307_p0 = scmp.lt.s32.totalorder %s1301_s18, %s1830_s5 }
 0x198   : > { %p1303_p11 = scmp.ne.s32.totalorder %s1301_s18, %s1302_s19  ;;  %p1308_p1 = scmp.lt.s32.totalorder %s1306_s26, %s1302_s19 }
 0x19a   : > { %p1304_p12 = pnand %p1303_p11, %p1429_p5  ;;  %p1309_p2 = por %p1308_p1, %p1307_p0 }
 0x19c   : > { %p1305_p13 = pneg %p1304_p12 }
 0x19e   : > { %p1310_p3 = pnand %p1309_p2, %p1305_p13 }
 0x1c8   : > { %v1209_v30 = vpop.permute.xlu2 %1208 }
 0x1c9   : > { %v1211_v61 = vunpack.i.h.bf16 %v1209_v30  ;;  %v1210_v18 = vunpack.i.l.bf16 %v1209_v30 }
 0x1d0   : > { %v1224_v33 = vpop.permute.xlu2 %1223 }
 0x1d1   : > { %v1226_v56 = vunpack.i.h.bf16 %v1224_v33  ;;  %v1225_v57 = vunpack.i.l.bf16 %v1224_v33 }
 0x1d8   : > { %v1239_v0 = vpop.permute.xlu2 %1238 }
 0x1de   : > { %v1204_v31 = vpop.permute.xlu1 %1203 }
 0x1df   : > { %v1206_v36 = vunpack.i.h.bf16 %v1204_v31  ;;  %v1205_v37 = vunpack.i.l.bf16 %v1204_v31  ;;  %v1114_v31 = vld [vmem:[%s1828_s3 + $0x1] sm:$0x1] }
 0x1e0   : > { %v1199_v35 = vpop.permute.xlu0 %1198 }
 0x1e1   : > { %v1201_v38 = vunpack.i.h.bf16 %v1199_v35  ;;  %v1200_v40 = vunpack.i.l.bf16 %v1199_v35 }
 0x1e3   : > { %v538_v43 = vsel %vm247_vm11, %v1205_v37, %v1200_v40  ;;  %v539_v44 = vsel %vm247_vm11, %v1206_v36, %v1201_v38  ;;  %v536_v47 = vsel %vm247_vm11, %v1200_v40, %v1205_v37  ;;  %v537_v34 = vsel %vm247_vm11, %v1201_v38, %v1206_v36 }
 0x1e4   : > { %v541_v41 = vpack.c.bf16 %v539_v44, %v538_v43  ;;  %v542_v49 = vpack.c.bf16 %v537_v34, %v536_v47  ;;  %v1241_v38 = vunpack.i.h.bf16 %v1239_v0  ;;  %v1240_v40 = vunpack.i.l.bf16 %v1239_v0 }
 0x1e6   : > { %v1219_v51 = vpop.permute.xlu1 %1218  ;;  %554 = vmatpush.bf16.msra.mxu2 %v541_v41  ;;  %567 = vmatpush.bf16.msra.mxu3 %v542_v49 }
 0x1e7   : > { %v1221_v53 = vunpack.i.h.bf16 %v1219_v51  ;;  %v1220_v55 = vunpack.i.l.bf16 %v1219_v51 }
 0x1e8   : > { %v1214_v59 = vpop.permute.xlu0 %1213 }
 0x1e9   : > { %v1216_v62 = vunpack.i.h.bf16 %v1214_v59  ;;  %v1215_v63 = vunpack.i.l.bf16 %v1214_v59  ;;  %1112 = vmatmul.msk.bf16.vlgmr.msra.gmra.mxu2 %vm543_vm15, %v540_v52  ;;  %1113 = vmatmul.msk.bf16.vlgmr.msra.gmra.mxu3 %vm543_vm15, %v540_v52  ;;  %v634_v1 = vsel %vm289_vm8, %v1225_v57, %v1220_v55  ;;  %v635_v2 = vsel %vm289_vm8, %v1226_v56, %v1221_v53 }
 0x1ea   : > { %v632_v3 = vsel %vm289_vm8, %v1220_v55, %v1225_v57  ;;  %v633_v6 = vsel %vm289_vm8, %v1221_v53, %v1226_v56  ;;  %v638_v7 = vpack.c.bf16 %v635_v2, %v634_v1 }
 0x1eb   : > { %v639_v8 = vpack.c.bf16 %v633_v6, %v632_v3  ;;  %v585_v10 = vsel %vm271_vm9, %v1215_v63, %v1210_v18  ;;  %v586_v5 = vsel %vm271_vm9, %v1216_v62, %v1211_v61  ;;  %v583_v12 = vsel %vm271_vm9, %v1210_v18, %v1215_v63 }
 0x1ec   : > { %v589_v11 = vpack.c.bf16 %v586_v5, %v585_v10  ;;  %v584_v13 = vsel %vm271_vm9, %v1211_v61, %v1216_v62  ;;  %650 = vmatpush.bf16.msrb.mxu0 %v638_v7  ;;  %v1123_v62 = vld [vmem:[%s1828_s3 + $0x4] sm:$0x1]  ;;  %vm1007_vm9 = vcmp.lt.s32.totalorder %v229_v20, 256 }
 0x1ed   : > { %663 = vmatpush.bf16.msrb.mxu1 %v639_v8  ;;  %v590_v14 = vpack.c.bf16 %v584_v13, %v583_v12  ;;  %v1120_v12 = vld [vmem:[%s1828_s3 + $0x3] sm:$0x1] }
 0x1ee   : > { %v1234_v16 = vpop.permute.xlu1 %1233  ;;  %601 = vmatpush.bf16.msrb.mxu2 %v589_v11 }
 0x1ef   : > { %614 = vmatpush.bf16.msrb.mxu3 %v590_v14  ;;  %1118 = vmatmul.msk.bf16.vlgmr.msrb.gmra.mxu0 %vm543_vm15, %v1117_v15  ;;  %v1236_v17 = vunpack.i.h.bf16 %v1234_v16  ;;  %v1235_v4 = vunpack.i.l.bf16 %v1234_v16 }
 0x1f0   : > { %736 = vmatpush.bf16.msra.mxu0 %v724_v27  ;;  %v1229_v54 = vpop.permute.xlu0 %1228  ;;  %1119 = vmatmul.msk.bf16.vlgmr.msrb.gmra.mxu1 %vm543_vm15, %v1117_v15  ;;  %v1254_v27 = vpop.permute.xlu2 %1253 }
 0x1f1   : > { %749 = vmatpush.bf16.msra.mxu1 %v725_v28  ;;  %v1231_v19 = vunpack.i.h.bf16 %v1229_v54  ;;  %v1230_v21 = vunpack.i.l.bf16 %v1229_v54  ;;  %v1256_v33 = vunpack.i.h.bf16 %v1254_v27  ;;  %v1255_v35 = vunpack.i.l.bf16 %v1254_v27  ;;  %v1129_v27 = vld [vmem:[%s1828_s3 + $0x6] sm:$0x1] }
 0x1f3   : > { %v682_v22 = vsel %vm311_vm12, %v1231_v19, %v1236_v17  ;;  %v684_v24 = vsel %vm311_vm12, %v1236_v17, %v1231_v19  ;;  %v681_v25 = vsel %vm311_vm12, %v1230_v21, %v1235_v4  ;;  %v683_v26 = vsel %vm311_vm12, %v1235_v4, %v1230_v21 }
 0x1f4   : > { %v687_v28 = vpack.c.bf16 %v684_v24, %v683_v26  ;;  %v688_v29 = vpack.c.bf16 %v682_v22, %v681_v25 }
 0x1f6   : > { %v1249_v30 = vpop.permute.xlu1 %1248  ;;  %699 = vmatpush.bf16.msra.mxu2 %v687_v28  ;;  %712 = vmatpush.bf16.msra.mxu3 %v688_v29  ;;  %v1126_v28 = vld [vmem:[%s1828_s3 + $0x5] sm:$0x1]  ;;  %v1132_v29 = vld [vmem:[%s1828_s3 + $0x7] sm:$0x1] }
 0x1f7   : > { %v1251_v36 = vunpack.i.h.bf16 %v1249_v30  ;;  %v1250_v37 = vunpack.i.l.bf16 %v1249_v30 }
 0x1f8   : > { %v1244_v43 = vpop.permute.xlu0 %1243  ;;  %v1269_v7 = vpop.permute.xlu2 %1268 }
 0x1f9   : > { %v814_v44 = vsel %vm347_vm10, %v1250_v37, %v1255_v35  ;;  %v815_v47 = vsel %vm347_vm10, %v1251_v36, %v1256_v33  ;;  %v816_v34 = vsel %vm347_vm10, %v1255_v35, %v1250_v37  ;;  %v817_v41 = vsel %vm347_vm10, %v1256_v33, %v1251_v36  ;;  %1115 = vmatmul.msk.bf16.vlgmr.msrb.gmra.mxu2 %vm543_vm15, %v1114_v31 }
 0x1fa   : > { %v820_v49 = vpack.c.bf16 %v815_v47, %v814_v44  ;;  %v821_v51 = vpack.c.bf16 %v817_v41, %v816_v34  ;;  %v1246_v52 = vunpack.i.h.bf16 %v1244_v43  ;;  %v1245_v53 = vunpack.i.l.bf16 %v1244_v43  ;;  %1116 = vmatmul.msk.bf16.vlgmr.msrb.gmra.mxu3 %vm543_vm15, %v1114_v31 }
 0x1fb   : > { %v1271_v13 = vunpack.i.h.bf16 %v1269_v7  ;;  %v1270_v16 = vunpack.i.l.bf16 %v1269_v7 }
 0x1fc   : > { %v766_v55 = vsel %vm329_vm3, %v1241_v38, %v1246_v52  ;;  %v768_v56 = vsel %vm329_vm3, %v1246_v52, %v1241_v38  ;;  %v765_v57 = vsel %vm329_vm3, %v1240_v40, %v1245_v53  ;;  %v767_v59 = vsel %vm329_vm3, %v1245_v53, %v1240_v40  ;;  %832 = vmatpush.bf16.msrb.mxu0 %v820_v49 }
 0x1fd   : > { %v771_v61 = vpack.c.bf16 %v766_v55, %v765_v57  ;;  %v772_v18 = vpack.c.bf16 %v768_v56, %v767_v59  ;;  %845 = vmatpush.bf16.msrb.mxu1 %v821_v51 }
 0x1fe   : > { %v1264_v63 = vpop.permute.xlu1 %1263 }
 0x1ff   : > { %783 = vmatpush.bf16.msrb.mxu2 %v771_v61  ;;  %796 = vmatpush.bf16.msrb.mxu3 %v772_v18  ;;  %v1266_v3 = vunpack.i.h.bf16 %v1264_v63  ;;  %v1265_v6 = vunpack.i.l.bf16 %v1264_v63 }
 0x200   : > { %v1259_v0 = vpop.permute.xlu0 %1258  ;;  %1124 = vmatmul.msk.bf16.vlgmr.msra.gmra.mxu0 %vm543_vm15, %v1123_v62  ;;  %1125 = vmatmul.msk.bf16.vlgmr.msra.gmra.mxu1 %vm543_vm15, %v1123_v62 }
 0x201   : > { %v1261_v1 = vunpack.i.h.bf16 %v1259_v0  ;;  %v1260_v2 = vunpack.i.l.bf16 %v1259_v0 }
 0x203   : > { %v864_v8 = vsel %vm369_vm7, %v1261_v1, %v1266_v3  ;;  %v863_v10 = vsel %vm369_vm7, %v1260_v2, %v1265_v6  ;;  %v866_v5 = vsel %vm369_vm7, %v1266_v3, %v1261_v1  ;;  %v865_v11 = vsel %vm369_vm7, %v1265_v6, %v1260_v2 }
 0x204   : > { %v869_v14 = vpack.c.bf16 %v864_v8, %v863_v10  ;;  %v870_v54 = vpack.c.bf16 %v866_v5, %v865_v11 }
 0x208   : > { %v1274_v15 = vpop.permute.xlu0 %1273 }
 0x209   : > { %v1276_v17 = vunpack.i.h.bf16 %v1274_v15  ;;  %v1275_v4 = vunpack.i.l.bf16 %v1274_v15  ;;  %1121 = vmatmul.msk.bf16.vlgmr.msra.gmra.mxu2 %vm543_vm15, %v1120_v12 }
 0x20a   : > { %1122 = vmatmul.msk.bf16.vlgmr.msra.gmra.mxu3 %vm543_vm15, %v1120_v12  ;;  %881 = vmatpush.bf16.msra.mxu2 %v869_v14 }
 0x20b   : > { %v913_v19 = vsel %vm387_vm1, %v1271_v13, %v1276_v17  ;;  %v915_v21 = vsel %vm387_vm1, %v1276_v17, %v1271_v13  ;;  %v912_v22 = vsel %vm387_vm1, %v1270_v16, %v1275_v4  ;;  %v914_v24 = vsel %vm387_vm1, %v1275_v4, %v1270_v16  ;;  %894 = vmatpush.bf16.msra.mxu3 %v870_v54 }
 0x20c   : > { %v918_v25 = vpack.c.bf16 %v913_v19, %v912_v22  ;;  %v919_v26 = vpack.c.bf16 %v915_v21, %v914_v24 }
 0x20e   : > { %930 = vmatpush.bf16.msra.mxu0 %v918_v25  ;;  %943 = vmatpush.bf16.msra.mxu1 %v919_v26 }
 0x210   : > { %1131 = vmatmul.msk.bf16.vlgmr.msrb.gmra.mxu1 %vm543_vm15, %v1129_v27  ;;  %1130 = vmatmul.msk.bf16.vlgmr.msrb.gmra.mxu0 %vm543_vm15, %v1129_v27 }
 0x219   : > { %1127 = vmatmul.msk.bf16.vlgmr.msrb.gmra.mxu2 %vm543_vm15, %v1126_v28 }
 0x21a   : > { %1128 = vmatmul.msk.bf16.vlgmr.msrb.gmra.mxu3 %vm543_vm15, %v1126_v28 }
 0x220   : > { %1137 = vmatmul.msk.bf16.vlgmr.msra.gmra.mxu1 %vm543_vm15, %v1135_v23  ;;  %1136 = vmatmul.msk.bf16.vlgmr.msra.gmra.mxu0 %vm543_vm15, %v1135_v23  ;;  %v957_v23 = vpop.permute.xlu1 %956 }
 0x229   : > { %1133 = vmatmul.msk.bf16.vlgmr.msra.gmra.mxu2 %vm543_vm15, %v1132_v29 }
 0x22a   : > { %1134 = vmatmul.msk.bf16.vlgmr.msra.gmra.mxu3 %vm543_vm15, %v1132_v29 }
 0x26c   : > { %v556_v30 = vpop.f32.mrf.mxu2  ;;  %v569_v31 = vpop.f32.mrf.mxu3 }
 0x26d   : > { %v665_v33 = vpop.f32.mrf.mxu1  ;;  %v652_v35 = vpop.f32.mrf.mxu0  ;;  %v573_v0 = vmul.f32 %v1609_v32, %v556_v30  ;;  %v574_v3 = vmul.f32 %v1556_v60, %v569_v31 }
 0x26e   : > { %v669_v2 = vmul.f32 %v1550_v58, %v652_v35  ;;  %v670_v5 = vmul.f32 %v1533_v50, %v665_v33 }
 0x274   : > { %v558_v36 = vpop.f32.mrf.mxu2  ;;  %v571_v37 = vpop.f32.mrf.mxu3 }
 0x275   : > { %v667_v38 = vpop.f32.mrf.mxu1  ;;  %v654_v40 = vpop.f32.mrf.mxu0  ;;  %v959_v36 = vperm.slane %v957_v23, 0 }
 0x27c   : > { %v603_v43 = vpop.f32.mrf.mxu2 }
 0x27d   : > { %v616_v44 = vpop.f32.mrf.mxu3  ;;  %v751_v47 = vpop.f32.mrf.mxu1  ;;  %v620_v63 = vmul.f32 %v1606_v39, %v603_v43 }
 0x27e   : > { %v738_v34 = vpop.f32.mrf.mxu0  ;;  %v623_v11 = vadd.f32 %v616_v44, %v574_v3 }
 0x27f   : > { %v622_v1 = vadd.f32 %v620_v63, %v573_v0 }
 0x280   : > { %v672_v15 = vadd.f32 %v670_v5, %v623_v11 }
 0x281   : > { %v671_v13 = vadd.f32 %v669_v2, %v622_v1 }
 0x284   : > { %v605_v41 = vpop.f32.mrf.mxu2 }
 0x285   : > { %v618_v49 = vpop.f32.mrf.mxu3  ;;  %v753_v51 = vpop.f32.mrf.mxu1 }
 0x286   : > { %v740_v52 = vpop.f32.mrf.mxu0 }
 0x28c   : > { %v701_v53 = vpop.f32.mrf.mxu2 }
 0x28d   : > { %v714_v55 = vpop.f32.mrf.mxu3  ;;  %v847_v56 = vpop.f32.mrf.mxu1  ;;  %v718_v7 = vmul.f32 %v1522_v46, %v701_v53 }
 0x28e   : > { %v834_v57 = vpop.f32.mrf.mxu0  ;;  %v719_v14 = vmul.f32 %v1556_v60, %v714_v55  ;;  %v852_v26 = vmul.f32 %v1512_v45, %v847_v56 }
 0x28f   : > { %v720_v39 = vadd.f32 %v718_v7, %v671_v13  ;;  %v851_v24 = vmul.f32 %v1522_v46, %v834_v57 }
 0x290   : > { %v721_v16 = vadd.f32 %v719_v14, %v672_v15 }
 0x291   : > { %v755_v54 = vadd.f32 %v738_v34, %v720_v39 }
 0x292   : > { %v756_v25 = vadd.f32 %v751_v47, %v721_v16 }
 0x294   : > { %v703_v59 = vpop.f32.mrf.mxu2 }
 0x295   : > { %v716_v61 = vpop.f32.mrf.mxu3  ;;  %v849_v18 = vpop.f32.mrf.mxu1 }
 0x296   : > { %v836_v62 = vpop.f32.mrf.mxu0 }
 0x29c   : > { %v785_v6 = vpop.f32.mrf.mxu2 }
 0x29d   : > { %v798_v8 = vpop.f32.mrf.mxu3  ;;  %v945_v10 = vpop.f32.mrf.mxu1  ;;  %v802_v32 = vmul.f32 %v1503_v42, %v785_v6 }
 0x29e   : > { %v932_v12 = vpop.f32.mrf.mxu0  ;;  %v803_v19 = vmul.f32 %v1533_v50, %v798_v8  ;;  %v950_v33 = vmul.f32 %v1578_v9, %v945_v10 }
 0x29f   : > { %v804_v22 = vadd.f32 %v802_v32, %v755_v54  ;;  %v949_v28 = vmul.f32 %v1503_v42, %v932_v12 }
 0x2a0   : > { %v805_v27 = vadd.f32 %v803_v19, %v756_v25 }
 0x2a1   : > { %v853_v60 = vadd.f32 %v851_v24, %v804_v22 }
 0x2a2   : > { %v854_v35 = vadd.f32 %v852_v26, %v805_v27 }
 0x2a4   : > { %v787_v58 = vpop.f32.mrf.mxu2 }
 0x2a5   : > { %v800_v17 = vpop.f32.mrf.mxu3  ;;  %v947_v4 = vpop.f32.mrf.mxu1 }
 0x2a6   : > { %v934_v21 = vpop.f32.mrf.mxu0 }
 0x2ac   : > { %v883_v29 = vpop.f32.mrf.mxu2 }
 0x2ad   : > { %v902_v30 = vadd.f32 %v883_v29, %v853_v60  ;;  %v896_v31 = vpop.f32.mrf.mxu3 }
 0x2ae   : > { %v901_v50 = vmul.f32 %v1527_v48, %v896_v31 }
 0x2af   : > { %v951_v37 = vadd.f32 %v949_v28, %v902_v30 }
 0x2b0   : > { %v903_v38 = vadd.f32 %v901_v50, %v854_v35 }
 0x2b1   : > { %v960_v46 = vadd.f32 %v959_v36, %v951_v37 }
 0x2b2   : > { %v952_v40 = vadd.f32 %v950_v33, %v903_v38 }
 0x2b3   : > { %v1138_v43 = vmul.f32 -1.442695, %v960_v46 }
 0x2b4   : > { %v961_v45 = vadd.f32 %v959_v36, %v952_v40  ;;  %v885_v44 = vpop.f32.mrf.mxu2 }
 0x2b5   : > { %1278 = vpow2.f32 %v1138_v43  ;;  %v898_v42 = vpop.f32.mrf.mxu3 }
 0x2b6   : > { %v1139_v47 = vmul.f32 -1.442695, %v961_v45 }
 0x2b8   : > { %1280 = vpow2.f32 %v1139_v47 }
 0x2bb   : > { %v1279_v34 = vpop.eup %1278 }
 0x2bc   : > { %v968_v41 = vadd.f32 1.0, %v1279_v34 }
 0x2be   : > { %v1281_v9 = vpop.eup %1280  ;;  %1282 = vrcp.f32 %v968_v41  ;;  %vm975_vm8 = vweird.f32 %v968_v41  ;;  %v981_v63 = vand.u32 2147483648, %v968_v41  ;;  %v979_v1 = vand.u32 2147483647, %v968_v41 }
 0x2bf   : > { %v969_v49 = vadd.f32 1.0, %v1281_v9 }
 0x2c0   : > { %v982_v8 = vor.u32 1.1754944e-38, %v981_v63  ;;  %vm980_vm4 = vcmp.eq.f32.partialorder %v979_v1, 8.507059e+37 }
 0x2c1   : > { %1284 = vrcp.f32 %v969_v49  ;;  %v996_v59 = vand.u32 2147483648, %v969_v49  ;;  %v994_v62 = vand.u32 2147483647, %v969_v49  ;;  %vm990_vm12 = vweird.f32 %v969_v49 }
 0x2c3   : > { %v997_v3 = vor.u32 1.1754944e-38, %v996_v59  ;;  %vm995_vm0 = vcmp.eq.f32.partialorder %v994_v62, 8.507059e+37 }
 0x2c4   : > { %v1283_v48 = vpop.eup %1282 }
 0x2c5   : > { %v971_v51 = vmul.f32 %v1283_v48, %v968_v41  ;;  %vm976_vm3 = vweird.f32 %v1283_v48 }
 0x2c6   : > { %vm1787_vm10 = vmor %vm975_vm8, %vm976_vm3 }
 0x2c7   : > { %v1285_v52 = vpop.eup %1284  ;;  %v972_v53 = vsub.f32 1.0, %v971_v51 }
 0x2c8   : > { %v986_v55 = vmul.f32 %v1285_v52, %v969_v49  ;;  %vm991_vm7 = vweird.f32 %v1285_v52 }
 0x2c9   : > { %v973_v56 = vmul.f32 %v1283_v48, %v972_v53  ;;  %vm992_vm1 = vmor %vm990_vm12, %vm991_vm7 }
 0x2ca   : > { %v987_v57 = vsub.f32 1.0, %v986_v55 }
 0x2cb   : > { %v974_v61 = vadd.f32 %v1283_v48, %v973_v56 }
 0x2cc   : > { %v988_v18 = vmul.f32 %v1285_v52, %v987_v57 }
 0x2cd   : > { %v978_v6 = vsel %vm1787_vm10, %v1283_v48, %v974_v61 }
 0x2ce   : > { %v989_v2 = vadd.f32 %v1285_v52, %v988_v18  ;;  %v983_v11 = vsel %vm980_vm4, %v982_v8, %v978_v6 }
 0x2d0   : > { %v993_v7 = vsel %vm992_vm1, %v1285_v52, %v989_v2 }
 0x2d1   : > { %v998_v10 = vsel %vm995_vm0, %v997_v3, %v993_v7 }
 0x2d2   : > { %v1002_v5 = vrot.slane %v998_v10, 7 }
 0x2d4   : > { %v1003_v12 = vsel %vm446_vm5, %v983_v11, %v1002_v5 }
 0x2d5   : > { %1009 = vst.msk [vmem:[%s220_s15] sm:$0x3] %vm1007_vm9, %v1003_v12 }
 0x2d6   : > { %1313 = shalt.err (!%p1310_p3)
}
 0x2d7   : > { %1145 = dma.vmem_to_hbm [thread:$0]  (%p1429_p5), %s1024_s16, 32, %s1026_s17, %s1011_s6  }
 0x2d8 PF: > { %p1151_p4 = scmp.ge.s32.totalorder %s1348_s23, 2  ;;  %s1037_s8 = sand.u32 1, %s1336_s20  }
 0x2d9   : > { %s1038_s9 = scalar_lea.sflag [#allocation4], %s1037_s8 }
 0x2da   : > { %p1148_p7 = pnand %p1151_p4, %p1433_p6 }
 0x2dc   : > { %p1149_p8 = pneg %p1148_p7 }
 0x2de   : > { %1331 = dma.done.wait (%p1149_p8), %s1038_s9, 32  }
 0x2df   : > { %1333 = vsyncadd (%p1149_p8), %s1038_s9, 4294967264  ;;  %p17_p9 = scmp.ge.s32.totalorder %s1417_s25, 4   ;;  %s1841_s20 = smov %s1340_s21 }
 0x2e0   : > { %s1842_s21 = smov %s1344_s22  ;;  %s1843_s22 = smov %s1427_s28 }
 0x2e1   : > { %s1844_s23 = smov %s1417_s25  ;;  %19 = sbr.rel (!%p17_p9) target bundleno = 6 (0x6), region = 84 }
 0x2e6   :  { %1044 = vsyncpa [#allocation4], 1 }
 0x2e7   :  { %1046 = vsyncpa [#allocation4 + $0x1], 1 }

</bundles_post_ra>
